<compile_context>
chip_gen: v6e
topology: v6e:2x2x1
jax: 0.10.0
libtpu: 0.0.40
codegen_flags: <defaults>
</compile_context>

<pallas_src>
import functools

import jax
import jax.numpy as jnp
from jax import lax
from jax.experimental import pallas as pl
from jax.experimental.pallas import tpu as pltpu


def _spcen_kernel(params_ref, m0_ref, x_ref, out_ref, m_scr, m_blk, *, eps):
    # params_ref: (4, M)  rows = [log_s, log_alpha, log_delta, log_r]
    # m0_ref:     (b_blk, 1, M)   initial smoother state for this batch block
    # x_ref:      (b_blk, t_blk, M) input tile
    # out_ref:    (b_blk, t_blk, M) output tile
    # m_scr:      (b_blk, 1, M) f32 recurrent state carried across time blocks
    # m_blk:      (b_blk, t_blk, M) f32 scratch holding m_t for the whole block
    b_blk, t_blk, m_dim = x_ref.shape

    # hoisted per-mel parameters, exp'd in-kernel like the module
    log_s = params_ref[0:1, :][:, None, :]        # (1, 1, M)
    log_alpha = params_ref[1:2, :][:, None, :]
    log_delta = params_ref[2:3, :][:, None, :]
    log_r = params_ref[3:4, :][:, None, :]

    s = jnp.exp(log_s)
    neg_alpha = -jnp.exp(log_alpha)
    delta = jnp.exp(log_delta)
    r = jnp.exp(log_r)
    delta_r = jnp.exp(r * log_delta)              # delta ** r

    # pre-broadcast the IIR constants once (JAX does not CSE broadcast_in_dim)
    carry_shape = (b_blk, 1, m_dim)
    s_b = jnp.broadcast_to(s, carry_shape)
    one_minus_s_b = jnp.broadcast_to(1.0 - s, carry_shape)

    # (re)initialize carried state at the first time block of each batch block
    @pl.when(pl.program_id(1) == 0)
    def _():
        m_scr[...] = m0_ref[...].astype(jnp.float32)

    # ---- phase 1: cheap serial IIR; state stays in vregs (fori carry) -------
    def body(t, m):
        frame = x_ref[:, pl.ds(t, 1), :].astype(jnp.float32)   # (b_blk, 1, M)
        m_new = one_minus_s_b * m + s_b * frame
        m_blk[:, pl.ds(t, 1), :] = m_new
        return m_new

    m_final = lax.fori_loop(0, t_blk, body, m_scr[...], unroll=8)
    m_scr[...] = m_final        # hand the state off to the next time block

    # ---- phase 2: batched transcendentals over the whole (b, t, M) slab -----
    x_all = x_ref[...].astype(jnp.float32)
    m_all = m_blk[...]
    # frame / (m + eps)^alpha  ==  frame * exp(-alpha * log(m + eps))
    norm = x_all * jnp.exp(neg_alpha * jnp.log(m_all + eps))
    out = jnp.exp(r * jnp.log(norm + delta)) - delta_r
    out_ref[...] = out.astype(out_ref.dtype)


def spcen_forward(x, log_s, log_alpha, log_delta, log_r,
                  m_last_frame=None, eps=1e-6, t_blk=None):
    """x: (B, T, M) float32; log_*: (M,). Returns (B, T, M)."""
    B, T, M = x.shape

    # lane-dense mel axis, sublane-aligned time blocks
    m_pad = ((M + 127) // 128) * 128
    if t_blk is None:
        t_blk = min(((T + 7) // 8) * 8, 256)      # fits comfortably in v7x scoped VMEM
    t_blk = ((t_blk + 7) // 8) * 8
    t_pad = ((T + t_blk - 1) // t_blk) * t_blk
    b_blk = B if B <= 8 else 8
    b_pad = ((B + b_blk - 1) // b_blk) * b_blk

    xp = x
    if (b_pad, t_pad, m_pad) != (B, T, M):
        xp = jnp.pad(x, ((0, b_pad - B), (0, t_pad - T), (0, m_pad - M)))

    # stacked log-parameters; pad with 0.0 (= log 1.0, numerically benign lanes)
    params = jnp.stack([log_s, log_alpha, log_delta, log_r]).astype(jnp.float32)
    if m_pad != M:
        params = jnp.pad(params, ((0, 0), (0, m_pad - M)))

    if m_last_frame is None:
        m0 = jnp.zeros((b_pad, 1, m_pad), dtype=jnp.float32)
    else:
        m0 = m_last_frame.reshape(B, 1, M).astype(jnp.float32)
        m0 = jnp.pad(m0, ((0, b_pad - B), (0, 0), (0, m_pad - M)))

    grid = (b_pad // b_blk, t_pad // t_blk)
    out_p = pl.pallas_call(
        functools.partial(_spcen_kernel, eps=eps),
        out_shape=jax.ShapeDtypeStruct((b_pad, t_pad, m_pad), x.dtype),
        grid_spec=pltpu.PrefetchScalarGridSpec(
            num_scalar_prefetch=0,
            grid=grid,
            in_specs=[
                pl.BlockSpec((4, m_pad), lambda b, t: (0, 0)),
                pl.BlockSpec((b_blk, 1, m_pad), lambda b, t: (b, 0, 0)),
                pl.BlockSpec((b_blk, t_blk, m_pad), lambda b, t: (b, t, 0)),
            ],
            out_specs=pl.BlockSpec((b_blk, t_blk, m_pad), lambda b, t: (b, t, 0)),
            scratch_shapes=[
                pltpu.VMEM((b_blk, 1, m_pad), jnp.float32),      # carried state
                pltpu.VMEM((b_blk, t_blk, m_pad), jnp.float32),  # m_t for the block
            ],
        ),
        compiler_params=pltpu.CompilerParams(
            dimension_semantics=("parallel", "arbitrary")),
    )(params, m0, xp)

    return out_p[:B, :T, :M]


def spcen_ref(x, log_s, log_alpha, log_delta, log_r, m_last_frame=None, eps=1e-6):
    """Pure-JAX reference mirroring the PyTorch loop."""
    s = jnp.exp(log_s)
    alpha = jnp.exp(log_alpha)
    delta = jnp.exp(log_delta)
    r = jnp.exp(log_r)
    B, T, M = x.shape
    m0 = (jnp.zeros((B, M), dtype=x.dtype) if m_last_frame is None
          else m_last_frame.reshape(B, M).astype(x.dtype))

    def step(m, frame):
        m_new = (1.0 - s) * m + s * frame
        o = (frame / (m_new + eps) ** alpha + delta) ** r - delta ** r
        return m_new, o

    _, out = lax.scan(step, m0, jnp.transpose(x, (1, 0, 2)))
    return jnp.transpose(out, (1, 0, 2))


if __name__ == "__main__":
    # Module-style deterministic parameter init (n_mels = 4)
    n_mels = 4
    log_s = jnp.full((n_mels,), jnp.log(1e-4), dtype=jnp.float32)
    log_alpha = jnp.full((n_mels,), jnp.log(0.98), dtype=jnp.float32)
    log_delta = jnp.full((n_mels,), jnp.log(2.0), dtype=jnp.float32)
    log_r = jnp.full((n_mels,), jnp.log(0.2), dtype=jnp.float32)

    key = jax.random.PRNGKey(0)
    k1, k2, k3 = jax.random.split(key, 3)

    # Test 1: default path (m_last_frame=None), B=2, T=8, M=4, non-negative mel-like x.
    x1 = jax.random.uniform(k1, (2, 8, n_mels), dtype=jnp.float32)
    out1 = jax.block_until_ready(
        spcen_forward(x1, log_s, log_alpha, log_delta, log_r))
    ref1 = spcen_ref(x1, log_s, log_alpha, log_delta, log_r)
    assert out1.shape == x1.shape and out1.dtype == x1.dtype
    assert jnp.allclose(out1, ref1, atol=5e-4, rtol=5e-4), (
        f"max abs err {jnp.max(jnp.abs(out1 - ref1))}")

    # Test 2: multiple time blocks (exercises cross-block state carry) + m_last_frame.
    x2 = jax.random.uniform(k2, (2, 24, n_mels), dtype=jnp.float32)
    m_last = jax.random.uniform(k3, (2, 1, n_mels), dtype=jnp.float32)
    out2 = jax.block_until_ready(
        spcen_forward(x2, log_s, log_alpha, log_delta, log_r,
                      m_last_frame=m_last, t_blk=8))
    ref2 = spcen_ref(x2, log_s, log_alpha, log_delta, log_r, m_last_frame=m_last)
    assert jnp.allclose(out2, ref2, atol=5e-4, rtol=5e-4), (
        f"max abs err {jnp.max(jnp.abs(out2 - ref2))}")

    print("KERNEL_OK")
</pallas_src>

<mosaic_0001>
module attributes {stable_mosaic.version = 11 : i64} {
  func.func @_spcen_kernel(%arg0: i32, %arg1: i32, %arg2: memref<4x128xf32, #tpu.memory_space<vmem>>, %arg3: memref<2x1x128xf32, #tpu.memory_space<vmem>>, %arg4: memref<2x8x128xf32, #tpu.memory_space<vmem>>, %arg5: memref<2x8x128xf32, #tpu.memory_space<vmem>>, %arg6: memref<2x1x128xf32, #tpu.memory_space<vmem>>, %arg7: memref<2x8x128xf32, #tpu.memory_space<vmem>>) attributes {dimension_semantics = [#tpu.dimension_semantics<parallel>, #tpu.dimension_semantics<arbitrary>], iteration_bounds = array<i64: 1, 1>, scalar_prefetch = 0 : i64, scratch_operands = 2 : i64, tpu.core_type = #tpu.core_type<tc>, window_params = [{pipeline_mode = #tpu.pipeline_mode<synchronous>, transform_indices = @transform_0, window_bounds = array<i64: 4, 128>}, {transform_indices = @transform_1, window_bounds = array<i64: 2, 1, 128>}, {transform_indices = @transform_2, window_bounds = array<i64: 2, 8, 128>}, {transform_indices = @transform_3, window_bounds = array<i64: 2, 8, 128>}]} {
    %c0 = arith.constant 0 : index
    %c0_0 = arith.constant 0 : index
    %0 = vector.load %arg2[%c0, %c0_0] : memref<4x128xf32, #tpu.memory_space<vmem>>, vector<1x128xf32>
    %1 = vector.shape_cast %0 : vector<1x128xf32> to vector<1x1x128xf32>
    %c1 = arith.constant 1 : index
    %c0_1 = arith.constant 0 : index
    %2 = vector.load %arg2[%c1, %c0_1] : memref<4x128xf32, #tpu.memory_space<vmem>>, vector<1x128xf32>
    %3 = vector.shape_cast %2 : vector<1x128xf32> to vector<1x1x128xf32>
    %c2 = arith.constant 2 : index
    %c0_2 = arith.constant 0 : index
    %4 = vector.load %arg2[%c2, %c0_2] : memref<4x128xf32, #tpu.memory_space<vmem>>, vector<1x128xf32>
    %5 = vector.shape_cast %4 : vector<1x128xf32> to vector<1x1x128xf32>
    %c3 = arith.constant 3 : index
    %c0_3 = arith.constant 0 : index
    %6 = vector.load %arg2[%c3, %c0_3] : memref<4x128xf32, #tpu.memory_space<vmem>>, vector<1x128xf32>
    %7 = vector.shape_cast %6 : vector<1x128xf32> to vector<1x1x128xf32>
    %8 = math.exp %1 : vector<1x1x128xf32>
    %9 = math.exp %3 : vector<1x1x128xf32>
    %cst = arith.constant 0.000000e+00 : f32
    %10 = vector.broadcast %cst : f32 to vector<1x1x128xf32>
    %11 = arith.subf %10, %9 : vector<1x1x128xf32>
    %12 = math.exp %5 : vector<1x1x128xf32>
    %13 = math.exp %7 : vector<1x1x128xf32>
    %14 = arith.mulf %13, %5 : vector<1x1x128xf32>
    %15 = math.exp %14 : vector<1x1x128xf32>
    %16 = vector.shape_cast %8 : vector<1x1x128xf32> to vector<1x1x128xf32>
    %17 = vector.broadcast %16 : vector<1x1x128xf32> to vector<2x1x128xf32>
    %cst_4 = arith.constant 1.000000e+00 : f32
    %18 = vector.broadcast %cst_4 : f32 to vector<1x1x128xf32>
    %19 = arith.subf %18, %8 : vector<1x1x128xf32>
    %20 = vector.shape_cast %19 : vector<1x1x128xf32> to vector<1x1x128xf32>
    %21 = vector.broadcast %20 : vector<1x1x128xf32> to vector<2x1x128xf32>
    %c0_i32 = arith.constant 0 : i32
    %22 = arith.cmpi eq, %arg1, %c0_i32 : i32
    %23 = arith.extui %22 : i1 to i32
    %c0_i32_5 = arith.constant 0 : i32
    %24 = arith.cmpi ne, %23, %c0_i32_5 : i32
    scf.if %24 {
      %c0_55 = arith.constant 0 : index
      %c0_56 = arith.constant 0 : index
      %c0_57 = arith.constant 0 : index
      %101 = vector.load %arg3[%c0_55, %c0_56, %c0_57] : memref<2x1x128xf32, #tpu.memory_space<vmem>>, vector<2x1x128xf32>
      %c0_58 = arith.constant 0 : index
      %c0_59 = arith.constant 0 : index
      %c0_60 = arith.constant 0 : index
      %102 = vector.load %arg6[%c0_58, %c0_59, %c0_60] : memref<2x1x128xf32, #tpu.memory_space<vmem>>, vector<2x1x128xf32>
      tpu.vector_store %arg6[%c0_58, %c0_59, %c0_60], %101 {strides = array<i32>} : memref<2x1x128xf32, #tpu.memory_space<vmem>>, vector<2x1x128xf32>,
    } else {
    }
    %c0_6 = arith.constant 0 : index
    %c0_7 = arith.constant 0 : index
    %c0_8 = arith.constant 0 : index
    %25 = vector.load %arg6[%c0_6, %c0_7, %c0_8] : memref<2x1x128xf32, #tpu.memory_space<vmem>>, vector<2x1x128xf32>
    %c0_i32_9 = arith.constant 0 : i32
    %c0_10 = arith.constant 0 : index
    %26 = arith.index_cast %c0_i32_9 : i32 to index
    %c0_11 = arith.constant 0 : index
    %27 = vector.load %arg4[%c0_10, %26, %c0_11] : memref<2x8x128xf32, #tpu.memory_space<vmem>>, vector<2x1x128xf32>
    %28 = arith.mulf %21, %25 : vector<2x1x128xf32>
    %29 = arith.mulf %17, %27 : vector<2x1x128xf32>
    %30 = arith.addf %28, %29 : vector<2x1x128xf32>
    %c0_12 = arith.constant 0 : index
    %31 = arith.index_cast %c0_i32_9 : i32 to index
    %c0_13 = arith.constant 0 : index
    %32 = vector.load %arg7[%c0_12, %31, %c0_13] : memref<2x8x128xf32, #tpu.memory_space<vmem>>, vector<2x1x128xf32>
    tpu.vector_store %arg7[%c0_12, %31, %c0_13], %30 {strides = array<i32>} : memref<2x8x128xf32, #tpu.memory_space<vmem>>, vector<2x1x128xf32>,
    %c1_i32 = arith.constant 1 : i32
    %c0_14 = arith.constant 0 : index
    %33 = arith.index_cast %c1_i32 : i32 to index
    %c0_15 = arith.constant 0 : index
    %34 = vector.load %arg4[%c0_14, %33, %c0_15] : memref<2x8x128xf32, #tpu.memory_space<vmem>>, vector<2x1x128xf32>
    %35 = arith.mulf %21, %30 : vector<2x1x128xf32>
    %36 = arith.mulf %17, %34 : vector<2x1x128xf32>
    %37 = arith.addf %35, %36 : vector<2x1x128xf32>
    %c0_16 = arith.constant 0 : index
    %38 = arith.index_cast %c1_i32 : i32 to index
    %c0_17 = arith.constant 0 : index
    %39 = vector.load %arg7[%c0_16, %38, %c0_17] : memref<2x8x128xf32, #tpu.memory_space<vmem>>, vector<2x1x128xf32>
    tpu.vector_store %arg7[%c0_16, %38, %c0_17], %37 {strides = array<i32>} : memref<2x8x128xf32, #tpu.memory_space<vmem>>, vector<2x1x128xf32>,
    %c2_i32 = arith.constant 2 : i32
    %c0_18 = arith.constant 0 : index
    %40 = arith.index_cast %c2_i32 : i32 to index
    %c0_19 = arith.constant 0 : index
    %41 = vector.load %arg4[%c0_18, %40, %c0_19] : memref<2x8x128xf32, #tpu.memory_space<vmem>>, vector<2x1x128xf32>
    %42 = arith.mulf %21, %37 : vector<2x1x128xf32>
    %43 = arith.mulf %17, %41 : vector<2x1x128xf32>
    %44 = arith.addf %42, %43 : vector<2x1x128xf32>
    %c0_20 = arith.constant 0 : index
    %45 = arith.index_cast %c2_i32 : i32 to index
    %c0_21 = arith.constant 0 : index
    %46 = vector.load %arg7[%c0_20, %45, %c0_21] : memref<2x8x128xf32, #tpu.memory_space<vmem>>, vector<2x1x128xf32>
    tpu.vector_store %arg7[%c0_20, %45, %c0_21], %44 {strides = array<i32>} : memref<2x8x128xf32, #tpu.memory_space<vmem>>, vector<2x1x128xf32>,
    %c3_i32 = arith.constant 3 : i32
    %c0_22 = arith.constant 0 : index
    %47 = arith.index_cast %c3_i32 : i32 to index
    %c0_23 = arith.constant 0 : index
    %48 = vector.load %arg4[%c0_22, %47, %c0_23] : memref<2x8x128xf32, #tpu.memory_space<vmem>>, vector<2x1x128xf32>
    %49 = arith.mulf %21, %44 : vector<2x1x128xf32>
    %50 = arith.mulf %17, %48 : vector<2x1x128xf32>
    %51 = arith.addf %49, %50 : vector<2x1x128xf32>
    %c0_24 = arith.constant 0 : index
    %52 = arith.index_cast %c3_i32 : i32 to index
    %c0_25 = arith.constant 0 : index
    %53 = vector.load %arg7[%c0_24, %52, %c0_25] : memref<2x8x128xf32, #tpu.memory_space<vmem>>, vector<2x1x128xf32>
    tpu.vector_store %arg7[%c0_24, %52, %c0_25], %51 {strides = array<i32>} : memref<2x8x128xf32, #tpu.memory_space<vmem>>, vector<2x1x128xf32>,
    %c4_i32 = arith.constant 4 : i32
    %c0_26 = arith.constant 0 : index
    %54 = arith.index_cast %c4_i32 : i32 to index
    %c0_27 = arith.constant 0 : index
    %55 = vector.load %arg4[%c0_26, %54, %c0_27] : memref<2x8x128xf32, #tpu.memory_space<vmem>>, vector<2x1x128xf32>
    %56 = arith.mulf %21, %51 : vector<2x1x128xf32>
    %57 = arith.mulf %17, %55 : vector<2x1x128xf32>
    %58 = arith.addf %56, %57 : vector<2x1x128xf32>
    %c0_28 = arith.constant 0 : index
    %59 = arith.index_cast %c4_i32 : i32 to index
    %c0_29 = arith.constant 0 : index
    %60 = vector.load %arg7[%c0_28, %59, %c0_29] : memref<2x8x128xf32, #tpu.memory_space<vmem>>, vector<2x1x128xf32>
    tpu.vector_store %arg7[%c0_28, %59, %c0_29], %58 {strides = array<i32>} : memref<2x8x128xf32, #tpu.memory_space<vmem>>, vector<2x1x128xf32>,
    %c5_i32 = arith.constant 5 : i32
    %c0_30 = arith.constant 0 : index
    %61 = arith.index_cast %c5_i32 : i32 to index
    %c0_31 = arith.constant 0 : index
    %62 = vector.load %arg4[%c0_30, %61, %c0_31] : memref<2x8x128xf32, #tpu.memory_space<vmem>>, vector<2x1x128xf32>
    %63 = arith.mulf %21, %58 : vector<2x1x128xf32>
    %64 = arith.mulf %17, %62 : vector<2x1x128xf32>
    %65 = arith.addf %63, %64 : vector<2x1x128xf32>
    %c0_32 = arith.constant 0 : index
    %66 = arith.index_cast %c5_i32 : i32 to index
    %c0_33 = arith.constant 0 : index
    %67 = vector.load %arg7[%c0_32, %66, %c0_33] : memref<2x8x128xf32, #tpu.memory_space<vmem>>, vector<2x1x128xf32>
    tpu.vector_store %arg7[%c0_32, %66, %c0_33], %65 {strides = array<i32>} : memref<2x8x128xf32, #tpu.memory_space<vmem>>, vector<2x1x128xf32>,
    %c6_i32 = arith.constant 6 : i32
    %c0_34 = arith.constant 0 : index
    %68 = arith.index_cast %c6_i32 : i32 to index
    %c0_35 = arith.constant 0 : index
    %69 = vector.load %arg4[%c0_34, %68, %c0_35] : memref<2x8x128xf32, #tpu.memory_space<vmem>>, vector<2x1x128xf32>
    %70 = arith.mulf %21, %65 : vector<2x1x128xf32>
    %71 = arith.mulf %17, %69 : vector<2x1x128xf32>
    %72 = arith.addf %70, %71 : vector<2x1x128xf32>
    %c0_36 = arith.constant 0 : index
    %73 = arith.index_cast %c6_i32 : i32 to index
    %c0_37 = arith.constant 0 : index
    %74 = vector.load %arg7[%c0_36, %73, %c0_37] : memref<2x8x128xf32, #tpu.memory_space<vmem>>, vector<2x1x128xf32>
    tpu.vector_store %arg7[%c0_36, %73, %c0_37], %72 {strides = array<i32>} : memref<2x8x128xf32, #tpu.memory_space<vmem>>, vector<2x1x128xf32>,
    %c7_i32 = arith.constant 7 : i32
    %c0_38 = arith.constant 0 : index
    %75 = arith.index_cast %c7_i32 : i32 to index
    %c0_39 = arith.constant 0 : index
    %76 = vector.load %arg4[%c0_38, %75, %c0_39] : memref<2x8x128xf32, #tpu.memory_space<vmem>>, vector<2x1x128xf32>
    %77 = arith.mulf %21, %72 : vector<2x1x128xf32>
    %78 = arith.mulf %17, %76 : vector<2x1x128xf32>
    %79 = arith.addf %77, %78 : vector<2x1x128xf32>
    %c0_40 = arith.constant 0 : index
    %80 = arith.index_cast %c7_i32 : i32 to index
    %c0_41 = arith.constant 0 : index
    %81 = vector.load %arg7[%c0_40, %80, %c0_41] : memref<2x8x128xf32, #tpu.memory_space<vmem>>, vector<2x1x128xf32>
    tpu.vector_store %arg7[%c0_40, %80, %c0_41], %79 {strides = array<i32>} : memref<2x8x128xf32, #tpu.memory_space<vmem>>, vector<2x1x128xf32>,
    %c8_i32 = arith.constant 8 : i32
    %c0_42 = arith.constant 0 : index
    %c0_43 = arith.constant 0 : index
    %c0_44 = arith.constant 0 : index
    %82 = vector.load %arg6[%c0_42, %c0_43, %c0_44] : memref<2x1x128xf32, #tpu.memory_space<vmem>>, vector<2x1x128xf32>
    tpu.vector_store %arg6[%c0_42, %c0_43, %c0_44], %79 {strides = array<i32>} : memref<2x1x128xf32, #tpu.memory_space<vmem>>, vector<2x1x128xf32>,
    %c0_45 = arith.constant 0 : index
    %c0_46 = arith.constant 0 : index
    %c0_47 = arith.constant 0 : index
    %83 = vector.load %arg4[%c0_45, %c0_46, %c0_47] : memref<2x8x128xf32, #tpu.memory_space<vmem>>, vector<2x8x128xf32>
    %c0_48 = arith.constant 0 : index
    %c0_49 = arith.constant 0 : index
    %c0_50 = arith.constant 0 : index
    %84 = vector.load %arg7[%c0_48, %c0_49, %c0_50] : memref<2x8x128xf32, #tpu.memory_space<vmem>>, vector<2x8x128xf32>
    %cst_51 = arith.constant 9.99999997E-7 : f32
    %85 = vector.broadcast %cst_51 : f32 to vector<2x8x128xf32>
    %86 = arith.addf %84, %85 : vector<2x8x128xf32>
    %87 = math.log %86 : vector<2x8x128xf32>
    %88 = vector.broadcast %11 : vector<1x1x128xf32> to vector<2x8x128xf32>
    %89 = arith.mulf %88, %87 : vector<2x8x128xf32>
    %90 = math.exp %89 : vector<2x8x128xf32>
    %91 = arith.mulf %83, %90 : vector<2x8x128xf32>
    %92 = vector.broadcast %12 : vector<1x1x128xf32> to vector<2x8x128xf32>
    %93 = arith.addf %91, %92 : vector<2x8x128xf32>
    %94 = math.log %93 : vector<2x8x128xf32>
    %95 = vector.broadcast %13 : vector<1x1x128xf32> to vector<2x8x128xf32>
    %96 = arith.mulf %95, %94 : vector<2x8x128xf32>
    %97 = math.exp %96 : vector<2x8x128xf32>
    %98 = vector.broadcast %15 : vector<1x1x128xf32> to vector<2x8x128xf32>
    %99 = arith.subf %97, %98 : vector<2x8x128xf32>
    %c0_52 = arith.constant 0 : index
    %c0_53 = arith.constant 0 : index
    %c0_54 = arith.constant 0 : index
    %100 = vector.load %arg5[%c0_52, %c0_53, %c0_54] : memref<2x8x128xf32, #tpu.memory_space<vmem>>, vector<2x8x128xf32>
    tpu.vector_store %arg5[%c0_52, %c0_53, %c0_54], %99 {strides = array<i32>} : memref<2x8x128xf32, #tpu.memory_space<vmem>>, vector<2x8x128xf32>,
    return
  }
  func.func @transform_0(%arg0: i32, %arg1: i32) -> (i32, i32) {
    %c0_i32 = arith.constant 0 : i32
    %c0_i32_0 = arith.constant 0 : i32
    %c0_i32_1 = arith.constant 0 : i32
    return %c0_i32, %c0_i32_0 : i32, i32
  }
  func.func @transform_1(%arg0: i32, %arg1: i32) -> (i32, i32, i32) {
    %c0_i32 = arith.constant 0 : i32
    %c0_i32_0 = arith.constant 0 : i32
    %c0_i32_1 = arith.constant 0 : i32
    return %arg0, %c0_i32, %c0_i32_0 : i32, i32, i32
  }
  func.func @transform_2(%arg0: i32, %arg1: i32) -> (i32, i32, i32) {
    %c0_i32 = arith.constant 0 : i32
    %c0_i32_0 = arith.constant 0 : i32
    return %arg0, %arg1, %c0_i32 : i32, i32, i32
  }
  func.func @transform_3(%arg0: i32, %arg1: i32) -> (i32, i32, i32) {
    %c0_i32 = arith.constant 0 : i32
    %c0_i32_0 = arith.constant 0 : i32
    return %arg0, %arg1, %c0_i32 : i32, i32, i32
  }
}

</mosaic_0001>

<bundles_post_ra>
// kernel: tpu_custom_call.1
= control target key start
LH: loop header
LB: loop body
LE: loop exit
PB: predicated region body
PF: predicated region fallthrough
CT: control target
= control target key end

     0   :  { %8 = vsyncpa [#allocation5], 0  ;;  %s434_s0 = inlined_call_operand.hbm [shape: f32[4,128], index: 0, kind: input, shape index: {}]   ;;  %s435_s1 = inlined_call_operand.hbm [shape: f32[2,1,128], index: 1, kind: input, shape index: {}]   ;;  %s436_s2 = inlined_call_operand.hbm [shape: f32[2,8,128], index: 2, kind: input, shape index: {}]   ;;  %s437_s3 = inlined_call_operand.hbm [shape: f32[2,8,128], index: 3, kind: output, shape index: {}]  }
   0x1   :  { %9 = vsyncpa [#allocation8], 0 }
   0x2   :  { %10 = vsyncpa [#allocation6], 0  ;;  %s351_s12 = smov [#allocation7]  }
   0x3   :  { %s26_s13 = sshll.u32 %s351_s12, 4  ;;  %s27_s13 = int_to_ptr.vmem [resolvable:$true] %s26_s13 }
   0x4   :  { %s273_s14 = scalar_lea.vmem %s27_s13, 32  ;;  %p278_p1 = scmp.lt.s32.totalorder %s27_s13, %s27_s13 }
   0x5   :  { %p274_p0 = scmp.ne.s32.totalorder %s27_s13, %s273_s14  ;;  %p279_p2 = scmp.lt.s32.totalorder %s273_s14, %s273_s14 }
   0x7   :  { %p280_p3 = por %p279_p2, %p278_p1 }
   0x9   :  { %p281_p4 = pnand %p280_p3, %p274_p0 }
   0xb   :  { %284 = shalt.err (!%p281_p4)
}
   0xc   :  { %s352_s15 = smov 16   ;;  %s353_s16 = smov 1  }
   0xd   :  { %32 = dma.hbm_to_vmem [thread:$0]  %s435_s1, 32, %s27_s13, [#allocation8], %s352_s15, %s352_s15, %s353_s16  }
   0xe   :  { %s354_s19 = smov [#allocation4]   ;;  %s355_s21 = smov [#allocation9]  }
   0xf   :  { %s17_s20 = sshll.u32 %s354_s19, 4  ;;  %s38_s22 = sshll.u32 %s355_s21, 4  ;;  %s18_s20 = int_to_ptr.vmem [resolvable:$true] %s17_s20  ;;  %s39_s22 = int_to_ptr.vmem [resolvable:$true] %s38_s22 }
  0x10   :  { %s293_s23 = scalar_lea.vmem %s18_s20, 64  ;;  %p298_p6 = scmp.lt.s32.totalorder %s18_s20, %s18_s20 }
  0x11   :  { %p294_p5 = scmp.ne.s32.totalorder %s18_s20, %s293_s23  ;;  %p299_p7 = scmp.lt.s32.totalorder %s293_s23, %s293_s23 }
  0x13   :  { %p300_p8 = por %p299_p7, %p298_p6 }
  0x15   :  { %p301_p9 = pnand %p300_p8, %p294_p5 }
  0x17   :  { %304 = shalt.err (!%p301_p9)
}
  0x18   :  { %20 = dma.hbm_to_vmem [thread:$0]  %s434_s0, 64, %s18_s20, [#allocation5]  }
  0x19   :  { %s313_s26 = scalar_lea.vmem %s39_s22, 256  ;;  %p318_p11 = scmp.lt.s32.totalorder %s39_s22, %s39_s22 }
  0x1a   :  { %p314_p10 = scmp.ne.s32.totalorder %s39_s22, %s313_s26  ;;  %p319_p12 = scmp.lt.s32.totalorder %s313_s26, %s313_s26 }
  0x1c   :  { %p320_p13 = por %p319_p12, %p318_p11 }
  0x1e   :  { %p321_p0 = pnand %p320_p13, %p314_p10 }
  0x20   :  { %324 = shalt.err (!%p321_p0)
}
  0x21   :  { %s356_s1 = smov 128   ;;  %s357_s27 = smov 8  }
  0x22   :  { %44 = dma.hbm_to_vmem [thread:$0]  %s436_s2, 256, %s39_s22, [#allocation8], %s356_s1, %s356_s1, %s357_s27  }
  0x23   :  { %345 = dma.done.wait [#allocation5], 64  }
  0x24   :  { %346 = vsyncadd [#allocation5], 4294967232 }
  0x25   :  { %347 = dma.done.wait [#allocation8], 288  }
  0x26   :  { %348 = vsyncadd [#allocation8], 4294967008  ;;  %v75_v0 = vld [vmem:[#allocation7] sm:$0x3]   ;;  %v54_v1 = vld [vmem:[#allocation4] sm:$0x1] }
  0x27   :  { %77 = vst [vmem:[#allocation2] sm:$0x3] %v75_v0   ;;  %v58_v2 = vmul.f32 1.442695, %v54_v1  ;;  %v81_v3 = vld [vmem:[#allocation9] sm:$0x1] }
  0x28   :  { %v82_v4 = vld [vmem:[#allocation9 + $0x8] sm:$0x1]  ;;  %v91_v11 = vld [vmem:[#allocation9 + $0x1] sm:$0x1]  ;;  %v92_v12 = vld [vmem:[#allocation9 + $0x9] sm:$0x1] }
  0x29   :  { %239 = vpow2.f32 %v58_v2  ;;  %v101_v19 = vld [vmem:[#allocation9 + $0x2] sm:$0x1]  ;;  %v102_v20 = vld [vmem:[#allocation9 + $0xa] sm:$0x1]  ;;  %v111_v27 = vld [vmem:[#allocation9 + $0x3] sm:$0x1] }
  0x2a   :  { %v112_v28 = vld [vmem:[#allocation9 + $0xb] sm:$0x1]  ;;  %v121_v35 = vld [vmem:[#allocation9 + $0x4] sm:$0x1]  ;;  %v122_v36 = vld [vmem:[#allocation9 + $0xc] sm:$0x1] }
  0x2b   :  { %v131_v43 = vld [vmem:[#allocation9 + $0x5] sm:$0x1]  ;;  %v132_v44 = vld [vmem:[#allocation9 + $0xd] sm:$0x1]  ;;  %v141_v51 = vld [vmem:[#allocation9 + $0x6] sm:$0x1] }
  0x2c   :  { %v142_v52 = vld [vmem:[#allocation9 + $0xe] sm:$0x1]  ;;  %v151_v59 = vld [vmem:[#allocation9 + $0x7] sm:$0x1]  ;;  %v152_v60 = vld [vmem:[#allocation9 + $0xf] sm:$0x1] }
  0x2d   :  { %s358_s0 = smov [#allocation10]  }
  0x2e   :  { %v79_v6 = vld [vmem:[#allocation2] sm:$0x1]  ;;  %v80_v7 = vld [vmem:[#allocation2 + $0x1] sm:$0x1]  ;;  %s218_s2 = sshll.u32 %s358_s0, 4  ;;  %s219_s2 = int_to_ptr.vmem [resolvable:$true] %s218_s2 }
  0x2f   :  { %s325_s30 = scalar_lea.vmem %s219_s2, 256  ;;  %p330_p2 = scmp.lt.s32.totalorder %s219_s2, %s219_s2 }
  0x30   :  { %p326_p1 = scmp.ne.s32.totalorder %s219_s2, %s325_s30  ;;  %p331_p3 = scmp.lt.s32.totalorder %s325_s30, %s325_s30 }
  0x32   :  { %p332_p4 = por %p331_p3, %p330_p2 }
  0x34   :  { %p333_p5 = pnand %p332_p4, %p326_p1 }
  0x36   :  { %v391_v5 = vpop.eup %239 }
  0x37   :  { %v394_v8 = vsub.f32 1.0, %v391_v5  ;;  %v85_v9 = vmul.f32 %v391_v5, %v81_v3  ;;  %v86_v10 = vmul.f32 %v391_v5, %v82_v4  ;;  %v95_v17 = vmul.f32 %v391_v5, %v91_v11  ;;  %v55_v3 = vld [vmem:[#allocation4 + $0x1] sm:$0x1] }
  0x38   :  { %v96_v18 = vmul.f32 %v391_v5, %v92_v12  ;;  %v105_v25 = vmul.f32 %v391_v5, %v101_v19  ;;  %v106_v26 = vmul.f32 %v391_v5, %v102_v20  ;;  %v115_v33 = vmul.f32 %v391_v5, %v111_v27 }
  0x39   :  { %v83_v13 = vmul.f32 %v79_v6, %v394_v8  ;;  %v84_v14 = vmul.f32 %v80_v7, %v394_v8  ;;  %v116_v34 = vmul.f32 %v391_v5, %v112_v28  ;;  %v125_v41 = vmul.f32 %v391_v5, %v121_v35 }
  0x3a   :  { %v126_v42 = vmul.f32 %v391_v5, %v122_v36  ;;  %v135_v49 = vmul.f32 %v391_v5, %v131_v43  ;;  %v136_v50 = vmul.f32 %v391_v5, %v132_v44  ;;  %v145_v57 = vmul.f32 %v391_v5, %v141_v51 }
  0x3b   :  { %v87_v15 = vadd.f32 %v85_v9, %v83_v13  ;;  %v88_v16 = vadd.f32 %v86_v10, %v84_v14  ;;  %v146_v58 = vmul.f32 %v391_v5, %v142_v52  ;;  %v155_v1 = vmul.f32 %v391_v5, %v151_v59 }
  0x3c   :  { %v156_v2 = vmul.f32 %v391_v5, %v152_v60  ;;  %v60_v10 = vmul.f32 1.442695, %v55_v3  ;;  %v173_v5 = vlaneseq }
  0x3d   :  { %89 = vst [vmem:[#allocation3] sm:$0x1] %v87_v15  ;;  %90 = vst [vmem:[#allocation3 + $0x8] sm:$0x1] %v88_v16  ;;  %v93_v21 = vmul.f32 %v87_v15, %v394_v8  ;;  %v94_v22 = vmul.f32 %v88_v16, %v394_v8 }
  0x3e   :  { %241 = vpow2.f32 %v60_v10  ;;  %v174_v15 = vshrl.u32 %v173_v5, 7 }
  0x3f   :  { %v97_v23 = vadd.f32 %v95_v17, %v93_v21  ;;  %v98_v24 = vadd.f32 %v96_v18, %v94_v22 }
  0x40   :  { %v175_v18 = vsub.s32 0, %v174_v15 }
  0x41   :  { %99 = vst [vmem:[#allocation3 + $0x1] sm:$0x1] %v97_v23  ;;  %100 = vst [vmem:[#allocation3 + $0x9] sm:$0x1] %v98_v24  ;;  %v103_v29 = vmul.f32 %v97_v23, %v394_v8  ;;  %v104_v30 = vmul.f32 %v98_v24, %v394_v8 }
  0x43   :  { %v107_v31 = vadd.f32 %v105_v25, %v103_v29  ;;  %v108_v32 = vadd.f32 %v106_v26, %v104_v30  ;;  %v57_v29 = vld [vmem:[#allocation4 + $0x3] sm:$0x1] }
  0x44   :  { %v65_v30 = vmul.f32 1.442695, %v57_v29 }
  0x45   :  { %109 = vst [vmem:[#allocation3 + $0x2] sm:$0x1] %v107_v31  ;;  %110 = vst [vmem:[#allocation3 + $0xa] sm:$0x1] %v108_v32  ;;  %v113_v37 = vmul.f32 %v107_v31, %v394_v8  ;;  %v114_v38 = vmul.f32 %v108_v32, %v394_v8  ;;  %v163_v32 = vld [vmem:[#allocation9] sm:$0xff] }
  0x47   :  { %v117_v39 = vadd.f32 %v115_v33, %v113_v37  ;;  %v118_v40 = vadd.f32 %v116_v34, %v114_v38  ;;  %v164_v33 = vld [vmem:[#allocation9 + $0x8] sm:$0xff] }
  0x49   :  { %119 = vst [vmem:[#allocation3 + $0x3] sm:$0x1] %v117_v39  ;;  %120 = vst [vmem:[#allocation3 + $0xb] sm:$0x1] %v118_v40  ;;  %v123_v45 = vmul.f32 %v117_v39, %v394_v8  ;;  %v124_v46 = vmul.f32 %v118_v40, %v394_v8 }
  0x4b   :  { %v127_v47 = vadd.f32 %v125_v41, %v123_v45  ;;  %v128_v48 = vadd.f32 %v126_v42, %v124_v46  ;;  %v242_v16 = vpop.eup %241 }
  0x4c   :  { %v62_v17 = vsub.f32 0.0, %v242_v16 }
  0x4d   :  { %129 = vst [vmem:[#allocation3 + $0x4] sm:$0x1] %v127_v47  ;;  %130 = vst [vmem:[#allocation3 + $0xc] sm:$0x1] %v128_v48  ;;  %v133_v53 = vmul.f32 %v127_v47, %v394_v8  ;;  %v134_v54 = vmul.f32 %v128_v48, %v394_v8 }
  0x4e   :  { %v176_v20 = vrot.slane %v62_v17, %v175_v18 }
  0x4f   :  { %v137_v55 = vadd.f32 %v135_v49, %v133_v53  ;;  %v138_v56 = vadd.f32 %v136_v50, %v134_v54 }
  0x51   :  { %139 = vst [vmem:[#allocation3 + $0x5] sm:$0x1] %v137_v55  ;;  %140 = vst [vmem:[#allocation3 + $0xd] sm:$0x1] %v138_v56  ;;  %v143_v61 = vmul.f32 %v137_v55, %v394_v8  ;;  %v144_v62 = vmul.f32 %v138_v56, %v394_v8 }
  0x53   :  { %v147_v63 = vadd.f32 %v145_v57, %v143_v61  ;;  %v148_v0 = vadd.f32 %v146_v58, %v144_v62 }
  0x55   :  { %149 = vst [vmem:[#allocation3 + $0x6] sm:$0x1] %v147_v63  ;;  %150 = vst [vmem:[#allocation3 + $0xe] sm:$0x1] %v148_v0  ;;  %v153_v4 = vmul.f32 %v147_v63, %v394_v8  ;;  %v154_v6 = vmul.f32 %v148_v0, %v394_v8  ;;  %v56_v8 = vld [vmem:[#allocation4 + $0x2] sm:$0x1] }
  0x56   :  { %v63_v19 = vmul.f32 1.442695, %v56_v8 }
  0x57   :  { %v157_v7 = vadd.f32 %v155_v1, %v153_v4  ;;  %v158_v9 = vadd.f32 %v156_v2, %v154_v6 }
  0x59   :  { %159 = vst [vmem:[#allocation3 + $0x7] sm:$0x1] %v157_v7  ;;  %161 = vst [vmem:[#allocation2] sm:$0x1] %v157_v7 }
  0x5a   :  { %160 = vst [vmem:[#allocation3 + $0xf] sm:$0x1] %v158_v9  ;;  %162 = vst [vmem:[#allocation2 + $0x1] sm:$0x1] %v158_v9 }
  0x60   :  { %v165_v11 = vld [vmem:[#allocation3] sm:$0xff] }
  0x61   :  { %v166_v12 = vld [vmem:[#allocation3 + $0x8] sm:$0xff]  ;;  %v167_v13 = vadd.f32 1e-06, %v165_v11 }
  0x62   :  { %v168_v14 = vadd.f32 1e-06, %v166_v12 }
  0x63   :  { %243 = vlog2.f32 %v167_v13 }
  0x64   :  { %245 = vlog2.f32 %v168_v14 }
  0x65   :  { %247 = vpow2.f32 %v63_v19 }
  0x70   :  { %v244_v21 = vpop.eup %243 }
  0x71   :  { %v246_v22 = vpop.eup %245  ;;  %v170_v23 = vmul.f32 0.6931472, %v244_v21 }
  0x72   :  { %v172_v24 = vmul.f32 0.6931472, %v246_v22  ;;  %v248_v31 = vpop.eup %247 }
  0x73   :  { %v177_v25 = vmul.f32 %v176_v20, %v170_v23  ;;  %v188_v34 = vrot.slane %v248_v31, %v175_v18 }
  0x74   :  { %v178_v26 = vmul.f32 %v176_v20, %v172_v24 }
  0x75   :  { %v179_v27 = vmul.f32 1.442695, %v177_v25 }
  0x76   :  { %v181_v28 = vmul.f32 1.442695, %v178_v26 }
  0x77   :  { %249 = vpow2.f32 %v179_v27 }
  0x78   :  { %251 = vpow2.f32 %v181_v28 }
  0x79   :  { %253 = vpow2.f32 %v65_v30 }
  0x84   :  { %v250_v35 = vpop.eup %249 }
  0x85   :  { %v252_v36 = vpop.eup %251  ;;  %v183_v37 = vmul.f32 %v250_v35, %v163_v32 }
  0x86   :  { %v184_v38 = vmul.f32 %v252_v36, %v164_v33  ;;  %v254_v41 = vpop.eup %253 }
  0x87   :  { %v189_v39 = vadd.f32 %v188_v34, %v183_v37  ;;  %v67_v42 = vmul.f32 %v254_v41, %v56_v8  ;;  %v198_v44 = vrot.slane %v254_v41, %v175_v18 }
  0x88   :  { %v190_v40 = vadd.f32 %v188_v34, %v184_v38 }
  0x89   :  { %255 = vlog2.f32 %v189_v39  ;;  %v68_v43 = vmul.f32 1.442695, %v67_v42 }
  0x8a   :  { %257 = vlog2.f32 %v190_v40 }
  0x8b   :  { %259 = vpow2.f32 %v68_v43 }
  0x96   :  { %v256_v45 = vpop.eup %255 }
  0x97   :  { %v258_v46 = vpop.eup %257  ;;  %v192_v47 = vmul.f32 0.6931472, %v256_v45 }
  0x98   :  { %v194_v48 = vmul.f32 0.6931472, %v258_v46  ;;  %v260_v53 = vpop.eup %259 }
  0x99   :  { %v199_v49 = vmul.f32 %v198_v44, %v192_v47  ;;  %v208_v54 = vrot.slane %v260_v53, %v175_v18 }
  0x9a   :  { %v200_v50 = vmul.f32 %v198_v44, %v194_v48 }
  0x9b   :  { %v201_v51 = vmul.f32 1.442695, %v199_v49 }
  0x9c   :  { %v203_v52 = vmul.f32 1.442695, %v200_v50 }
  0x9d   :  { %261 = vpow2.f32 %v201_v51 }
  0x9e   :  { %263 = vpow2.f32 %v203_v52 }
  0xaa   :  { %v262_v55 = vpop.eup %261 }
  0xab   :  { %v264_v56 = vpop.eup %263  ;;  %v209_v57 = vsub.f32 %v262_v55, %v208_v54 }
  0xac   :  { %v210_v58 = vsub.f32 %v264_v56, %v208_v54 }
  0xad   :  { %211 = vst [vmem:[#allocation10] sm:$0xff] %v209_v57 }
  0xae   :  { %212 = vst [vmem:[#allocation10 + $0x8] sm:$0xff] %v210_v58 }
  0xaf   :  { %336 = shalt.err (!%p333_p5)
}
  0xb0   :  { %224 = dma.vmem_to_hbm [thread:$0]  %s219_s2, 256, %s437_s3, [#allocation6], %s356_s1, %s356_s1, %s357_s27  }
  0xb1   :  { %349 = dma.done.wait [#allocation6], 256  }
  0xb2   :  { %350 = vsyncadd [#allocation6], 4294967040 }
  0xb3   :  { %228 = vsyncpa [#allocation5], 1 }
  0xb4   :  { %229 = vsyncpa [#allocation8], 1 }
  0xb5   :  { %230 = vsyncpa [#allocation6], 1 }

</bundles_post_ra>
